<compile_context>
chip_gen: v6e
topology: v6e:2x2x1
jax: 0.10.0
libtpu: 0.0.40
codegen_flags: <defaults>
</compile_context>

<pallas_src>
import functools

import jax
import jax.numpy as jnp
from jax.experimental import pallas as pl
from jax.experimental.pallas import tpu as pltpu

_LANE = 128              # lanes per vreg
_SUB = 8                 # sublanes per vreg
_MAX_BLOCK_ROWS = 4096   # (4096,128) f32 block = 2 MiB; x2 inputs x2 buffers = 8 MiB VMEM
_SUB_ROWS = 512          # inner streaming slice (keeps f32 temps ~256 KiB each)


def _bce_kernel(p_ref, t_ref, o_ref, *, blocks_per_chunk, block_rows, sub_rows,
                num_blocks, n_valid, tail_mask, needs_clamp):
    c = pl.program_id(0)                       # chunk (TensorCore) index
    i = pl.program_id(1)                       # block within chunk (reduction axis)
    blk = c * blocks_per_chunk + i             # logical (unclamped) block index

    @pl.when(i == 0)
    def _init():
        o_ref[...] = jnp.zeros_like(o_ref)

    def fold(masked):
        def body(j, acc):
            r0 = pl.multiple_of(j * sub_rows, sub_rows)
            p = p_ref[pl.ds(r0, sub_rows), :].astype(jnp.float32)
            t = t_ref[pl.ds(r0, sub_rows), :].astype(jnp.float32)
            # PyTorch BCELoss clamps each log term at -100 (keeps p==0/p==1 finite).
            log_p = jnp.maximum(jnp.log(p), -100.0)
            log_1mp = jnp.maximum(jnp.log(1.0 - p), -100.0)
            # == t*log(p) + (1-t)*log(1-p), with one fewer sub/mul; negated outside.
            s = log_1mp + t * (log_p - log_1mp)
            if masked:
                row = (blk * block_rows + r0
                       + jax.lax.broadcasted_iota(jnp.int32, (sub_rows, _LANE), 0))
                lane = jax.lax.broadcasted_iota(jnp.int32, (sub_rows, _LANE), 1)
                # Must stay a select (not a multiply): out-of-range rows hold
                # unspecified VMEM whose log() may be NaN/Inf.
                s = jnp.where(row * _LANE + lane < n_valid, s, 0.0)
            # Fold onto a vreg-shaped (8,128) partial with pure VPU adds.
            return acc + s.reshape(sub_rows // _SUB, _SUB, _LANE).sum(axis=0)

        acc = jax.lax.fori_loop(0, block_rows // sub_rows, body,
                                jnp.zeros((_SUB, _LANE), jnp.float32))
        o_ref[...] += acc.reshape(1, _SUB, _LANE)

    last = num_blocks - 1
    if tail_mask:
        # Only the single boundary block pays for the element mask; duplicated
        # (clamped) overflow blocks (blk > last) are skipped entirely.
        @pl.when(blk < last)
        def _full():
            fold(False)

        @pl.when(blk == last)
        def _tail():
            fold(True)
    elif needs_clamp:
        @pl.when(blk <= last)
        def _full():
            fold(False)
    else:
        fold(False)


def bce_loss_2d(predict, target):
    """Pallas equivalent of BCELoss2d.forward(predict, target) -> scalar f32."""
    p = predict.reshape(-1)
    t = target.reshape(-1)
    n = p.shape[0]
    if n == 0:
        # nn.BCELoss() with reduction='mean' on empty input yields NaN.
        return jnp.float32(float("nan"))

    # View the flat arrays as a lane-dense (rows, 128) slab.  Pad (a copy) only
    # when unavoidable: n not a multiple of 128, or too small for an (8,128) tile.
    padded = max(_SUB * _LANE, pl.cdiv(n, _LANE) * _LANE)
    if padded != n:
        # TODO(synk): this concatenate copies the inputs through HBM; it only
        # triggers for n % 128 != 0 or n < 1024 (rare for CNN feature maps).
        pad = padded - n
        p = jnp.concatenate([p, jnp.ones((pad,), p.dtype)])
        t = jnp.concatenate([t, jnp.ones((pad,), t.dtype)])

    rows = padded // _LANE                                   # >= 8
    p2 = p.reshape(rows, _LANE)
    t2 = t.reshape(rows, _LANE)

    block_rows = min(_MAX_BLOCK_ROWS, (rows // _SUB) * _SUB)  # multiple of 8
    num_blocks = pl.cdiv(rows, block_rows)
    sub_rows = _SUB_ROWS if block_rows % _SUB_ROWS == 0 else block_rows

    # Single-TC chips (v5e/v6e): one chunk.  v7x (2 TCs/chip): split in two.
    try:
        kind = jax.devices()[0].device_kind.lower()
    except Exception:  # pragma: no cover - defensive
        kind = ""
    multi_tc = ("v7" in kind) or ("tpu7" in kind)
    n_chunks = 2 if (multi_tc and num_blocks >= 2) else 1

    blocks_per_chunk = pl.cdiv(num_blocks, n_chunks)
    needs_clamp = (n_chunks * blocks_per_chunk != num_blocks)
    tail_mask = (num_blocks * block_rows * _LANE != n)

    if needs_clamp:
        last = num_blocks - 1
        in_map = lambda c, i: (jnp.minimum(c * blocks_per_chunk + i, last), 0)
    else:
        in_map = lambda c, i: (c * blocks_per_chunk + i, 0)

    kernel = functools.partial(
        _bce_kernel,
        blocks_per_chunk=blocks_per_chunk,
        block_rows=block_rows,
        sub_rows=sub_rows,
        num_blocks=num_blocks,
        n_valid=n,
        tail_mask=tail_mask,
        needs_clamp=needs_clamp,
    )

    if n_chunks == 2:
        lead_sem = getattr(pltpu, "CORE_PARALLEL", pltpu.PARALLEL)
        dims = (lead_sem, pltpu.ARBITRARY)
    else:
        dims = (pltpu.ARBITRARY, pltpu.ARBITRARY)

    bytes_accessed = (n * (p2.dtype.itemsize + t2.dtype.itemsize)
                      + n_chunks * _SUB * _LANE * 4)

    partials = pl.pallas_call(
        kernel,
        out_shape=jax.ShapeDtypeStruct((n_chunks, _SUB, _LANE), jnp.float32),
        grid_spec=pltpu.PrefetchScalarGridSpec(
            num_scalar_prefetch=0,
            grid=(n_chunks, blocks_per_chunk),
            in_specs=[
                pl.BlockSpec((block_rows, _LANE), in_map),
                pl.BlockSpec((block_rows, _LANE), in_map),
            ],
            # Block index constant along the inner axis -> resident accumulator.
            out_specs=pl.BlockSpec((1, _SUB, _LANE), lambda c, i: (c, 0, 0)),
        ),
        compiler_params=pltpu.CompilerParams(dimension_semantics=dims),
        cost_estimate=pl.CostEstimate(flops=5 * n, transcendentals=2 * n,
                                      bytes_accessed=bytes_accessed),
    )(p2, t2)

    # Tiny (n_chunks, 8, 128) final reduce; negation + mean done here.
    return -jnp.sum(partials) / jnp.float32(n)


def _reference(predict, target):
    p = predict.reshape(-1).astype(jnp.float32)
    t = target.reshape(-1).astype(jnp.float32)
    log_p = jnp.maximum(jnp.log(p), -100.0)
    log_1mp = jnp.maximum(jnp.log(1.0 - p), -100.0)
    return jnp.mean(-(t * log_p + (1.0 - t) * log_1mp))


if __name__ == "__main__":
    key = jax.random.PRNGKey(0)
    kp, kt = jax.random.split(key)
    # NCHW; predict must be probabilities in (0, 1), target in [0, 1].
    shape = (2, 4, 16, 16)
    predict = jax.nn.sigmoid(jax.random.normal(kp, shape, dtype=jnp.float32))
    target = (jax.random.uniform(kt, shape, dtype=jnp.float32) > 0.5).astype(jnp.float32)

    loss = jax.jit(bce_loss_2d)(predict, target)
    jax.block_until_ready(loss)

    ref = _reference(predict, target)
    assert jnp.allclose(loss, ref, rtol=1e-5, atol=1e-5), (loss, ref)
    print("KERNEL_OK")
</pallas_src>

<mosaic_0001>
module attributes {stable_mosaic.version = 11 : i64} {
  func.func @_bce_kernel(%arg0: i32, %arg1: i32, %arg2: memref<16x128xf32, #tpu.memory_space<vmem>>, %arg3: memref<16x128xf32, #tpu.memory_space<vmem>>, %arg4: memref<1x8x128xf32, #tpu.memory_space<vmem>>) attributes {dimension_semantics = [#tpu.dimension_semantics<arbitrary>, #tpu.dimension_semantics<arbitrary>], iteration_bounds = array<i64: 1, 1>, scalar_prefetch = 0 : i64, scratch_operands = 0 : i64, tpu.core_type = #tpu.core_type<tc>, window_params = [{transform_indices = @transform_0, window_bounds = array<i64: 16, 128>}, {transform_indices = @transform_1, window_bounds = array<i64: 16, 128>}, {transform_indices = @transform_2, window_bounds = array<i64: 1, 8, 128>}]} {
    %c0_i32 = arith.constant 0 : i32
    %0 = arith.cmpi eq, %arg1, %c0_i32 : i32
    %1 = arith.extui %0 : i1 to i32
    %c0_i32_0 = arith.constant 0 : i32
    %2 = arith.cmpi ne, %1, %c0_i32_0 : i32
    scf.if %2 {
      %cst_13 = arith.constant 0.000000e+00 : f32
      %28 = vector.broadcast %cst_13 : f32 to vector<1x8x128xf32>
      %c0_14 = arith.constant 0 : index
      %c0_15 = arith.constant 0 : index
      %c0_16 = arith.constant 0 : index
      %29 = vector.load %arg4[%c0_14, %c0_15, %c0_16] : memref<1x8x128xf32, #tpu.memory_space<vmem>>, vector<1x8x128xf32>
      tpu.vector_store %arg4[%c0_14, %c0_15, %c0_16], %28 {strides = array<i32>} : memref<1x8x128xf32, #tpu.memory_space<vmem>>, vector<1x8x128xf32>,
    } else {
    }
    %cst = arith.constant 0.000000e+00 : f32
    %3 = vector.broadcast %cst : f32 to vector<8x128xf32>
    %c0_i32_1 = arith.constant 0 : i32
    %c16_i32 = arith.constant 16 : i32
    %4 = arith.muli %c0_i32_1, %c16_i32 : i32
    %5 = tpu.assume_multiple %4, 16 : i32
    %6 = arith.index_cast %5 : i32 to index
    %c0 = arith.constant 0 : index
    %7 = vector.load %arg2[%6, %c0] : memref<16x128xf32, #tpu.memory_space<vmem>>, vector<16x128xf32>
    %8 = arith.index_cast %5 : i32 to index
    %c0_2 = arith.constant 0 : index
    %9 = vector.load %arg3[%8, %c0_2] : memref<16x128xf32, #tpu.memory_space<vmem>>, vector<16x128xf32>
    %10 = math.log %7 : vector<16x128xf32>
    %cst_3 = arith.constant -1.000000e+02 : f32
    %11 = vector.broadcast %cst_3 : f32 to vector<16x128xf32>
    %12 = arith.maximumf %10, %11 : vector<16x128xf32>
    %cst_4 = arith.constant 1.000000e+00 : f32
    %13 = vector.broadcast %cst_4 : f32 to vector<16x128xf32>
    %14 = arith.subf %13, %7 : vector<16x128xf32>
    %15 = math.log %14 : vector<16x128xf32>
    %cst_5 = arith.constant -1.000000e+02 : f32
    %16 = vector.broadcast %cst_5 : f32 to vector<16x128xf32>
    %17 = arith.maximumf %15, %16 : vector<16x128xf32>
    %18 = arith.subf %12, %17 : vector<16x128xf32>
    %19 = arith.mulf %9, %18 : vector<16x128xf32>
    %20 = arith.addf %17, %19 : vector<16x128xf32>
    %21 = vector.shape_cast %20 : vector<16x128xf32> to vector<2x8x128xf32>
    %cst_6 = arith.constant dense<0.000000e+00> : vector<8x128xf32>
    %22 = vector.multi_reduction <add>, %21, %cst_6 [0] : vector<2x8x128xf32> to vector<8x128xf32>
    %23 = arith.addf %3, %22 : vector<8x128xf32>
    %c1_i32 = arith.constant 1 : i32
    %c0_7 = arith.constant 0 : index
    %c0_8 = arith.constant 0 : index
    %c0_9 = arith.constant 0 : index
    %24 = vector.load %arg4[%c0_7, %c0_8, %c0_9] : memref<1x8x128xf32, #tpu.memory_space<vmem>>, vector<1x8x128xf32>
    %25 = vector.shape_cast %23 : vector<8x128xf32> to vector<1x8x128xf32>
    %26 = arith.addf %24, %25 : vector<1x8x128xf32>
    %c0_10 = arith.constant 0 : index
    %c0_11 = arith.constant 0 : index
    %c0_12 = arith.constant 0 : index
    %27 = vector.load %arg4[%c0_10, %c0_11, %c0_12] : memref<1x8x128xf32, #tpu.memory_space<vmem>>, vector<1x8x128xf32>
    tpu.vector_store %arg4[%c0_10, %c0_11, %c0_12], %26 {strides = array<i32>} : memref<1x8x128xf32, #tpu.memory_space<vmem>>, vector<1x8x128xf32>,
    return
  }
  func.func @transform_0(%arg0: i32, %arg1: i32) -> (i32, i32) {
    %c1_i32 = arith.constant 1 : i32
    %0 = arith.muli %arg0, %c1_i32 : i32
    %1 = arith.addi %0, %arg1 : i32
    %c0_i32 = arith.constant 0 : i32
    %c0_i32_0 = arith.constant 0 : i32
    return %1, %c0_i32 : i32, i32
  }
  func.func @transform_1(%arg0: i32, %arg1: i32) -> (i32, i32) {
    %c1_i32 = arith.constant 1 : i32
    %0 = arith.muli %arg0, %c1_i32 : i32
    %1 = arith.addi %0, %arg1 : i32
    %c0_i32 = arith.constant 0 : i32
    %c0_i32_0 = arith.constant 0 : i32
    return %1, %c0_i32 : i32, i32
  }
  func.func @transform_2(%arg0: i32, %arg1: i32) -> (i32, i32, i32) {
    %c0_i32 = arith.constant 0 : i32
    %c0_i32_0 = arith.constant 0 : i32
    %c0_i32_1 = arith.constant 0 : i32
    return %arg0, %c0_i32, %c0_i32_0 : i32, i32, i32
  }
}

</mosaic_0001>

<bundles_post_ra>
// kernel: bce_loss_2d.1
= control target key start
LH: loop header
LB: loop body
LE: loop exit
PB: predicated region body
PF: predicated region fallthrough
CT: control target
= control target key end

     0   :  { %s144_s0 = inlined_call_operand.vmem [shape: f32[16,128], index: 0, kind: input, shape index: {}]   ;;  %s145_s1 = inlined_call_operand.vmem [shape: f32[16,128], index: 1, kind: input, shape index: {}]   ;;  %s146_s2 = inlined_call_operand.vmem [shape: f32[1,8,128], index: 2, kind: output, shape index: {}]  }
   0x1   :  { %v60_v0 = vld [vmem:[%s144_s0] sm:$0xff]  ;;  %v61_v1 = vld [vmem:[%s144_s0 + $0x8] sm:$0xff] }
   0x2   :  { %106 = vlog2.f32 %v60_v0  ;;  %v70_v2 = vsub.f32 1.0, %v60_v0  ;;  %v71_v3 = vsub.f32 1.0, %v61_v1  ;;  %v62_v15 = vld [vmem:[%s145_s1] sm:$0xff]  ;;  %v63_v17 = vld [vmem:[%s145_s1 + $0x8] sm:$0xff] }
   0x3   :  { %108 = vlog2.f32 %v61_v1 }
   0x4   :  { %110 = vlog2.f32 %v70_v2 }
   0x5   :  { %112 = vlog2.f32 %v71_v3 }
   0xf   :  { %v107_v4 = vpop.eup %106 }
  0x10   :  { %v109_v5 = vpop.eup %108  ;;  %v65_v6 = vmul.f32 0.6931472, %v107_v4 }
  0x11   :  { %v111_v7 = vpop.eup %110  ;;  %v67_v8 = vmul.f32 0.6931472, %v109_v5 }
  0x12   :  { %v113_v9 = vpop.eup %112  ;;  %v68_v10 = vmax.f32 %v65_v6, -100.0  ;;  %v73_v11 = vmul.f32 0.6931472, %v111_v7 }
  0x13   :  { %v69_v12 = vmax.f32 %v67_v8, -100.0  ;;  %v75_v13 = vmul.f32 0.6931472, %v113_v9 }
  0x14   :  { %v76_v14 = vmax.f32 %v73_v11, -100.0 }
  0x15   :  { %v77_v16 = vmax.f32 %v75_v13, -100.0 }
  0x16   :  { %v78_v18 = vsub.f32 %v68_v10, %v76_v14 }
  0x17   :  { %v79_v19 = vsub.f32 %v69_v12, %v77_v16 }
  0x18   :  { %v80_v20 = vmul.f32 %v78_v18, %v62_v15 }
  0x19   :  { %v81_v21 = vmul.f32 %v79_v19, %v63_v17 }
  0x1a   :  { %v82_v22 = vadd.f32 %v80_v20, %v76_v14 }
  0x1b   :  { %v83_v23 = vadd.f32 %v81_v21, %v77_v16 }
  0x1d   :  { %v84_v24 = vadd.f32 %v83_v23, %v82_v22 }
  0x1f   :  { %88 = vst [vmem:[%s146_s2] sm:$0xff] %v84_v24 }

</bundles_post_ra>
